<compile_context>
chip_gen: v7x
topology: tpu7x:2x2x1
jax: 0.10.0
libtpu: 0.0.40
codegen_flags: <defaults>
</compile_context>

<pallas_src>
import functools

import jax
import jax.numpy as jnp
import numpy as np
from jax.experimental import pallas as pl
from jax.experimental.pallas import tpu as pltpu


def _iou_ce_kernel(logits_ref, labels_ref, ce_ref, hist_ref, ce_acc, hist_acc):
    i = pl.program_id(1)  # pixel-tile index (reduction axis)

    @pl.when(i == 0)
    def _():
        ce_acc[...] = jnp.zeros_like(ce_acc)
        hist_acc[...] = jnp.zeros_like(hist_acc)

    x = logits_ref[0]                                  # (C, TP) f32, pixels on lanes
    t = labels_ref[0]                                  # (1, TP) int32
    C, TP = x.shape
    cls = jax.lax.broadcasted_iota(jnp.int32, (C, TP), 0)

    # --- cross entropy per pixel (class axis = sublanes) ---
    m = jnp.max(x, axis=0, keepdims=True)              # (1, TP)  XLU reduce
    lse = m + jnp.log(jnp.sum(jnp.exp(x - m), axis=0, keepdims=True))
    onehot_t = cls == t                                 # (C, TP) bool
    tgt = jnp.sum(jnp.where(onehot_t, x, 0.0), axis=0, keepdims=True)
    ce_acc[...] += lse - tgt                            # lane-wide f32 partials

    # --- argmax over classes (first max, matching numpy/torch argmax) ---
    is_max = x == m
    pred = jnp.min(jnp.where(is_max, cls, C), axis=0, keepdims=True)   # (1, TP)
    onehot_p = cls == pred                              # (C, TP) bool

    # --- confusion matrix: hist[true, pred] += 1 over valid labels.
    # bf16 one-hots (exact 0/1), contract the pixel (lane) axis of both on the
    # MXU — no in-kernel transpose needed.
    valid = (t >= 0) & (t < C)                          # (1, TP)
    oh_t = (onehot_t & valid).astype(jnp.bfloat16)
    oh_p = onehot_p.astype(jnp.bfloat16)
    hist_acc[...] += jax.lax.dot_general(
        oh_t, oh_p, (((1,), (1,)), ((), ())),
        preferred_element_type=jnp.float32)

    # --- finalize: touch the (tiny) output blocks only once per batch shard ---
    @pl.when(i == pl.num_programs(1) - 1)
    def _():
        ce_ref[...] = jnp.sum(ce_acc[...])[None, None, None]
        hist_ref[...] = hist_acc[...][None]


def _pick_tile(hw, tile):
    """Largest pixel tile <= `tile` that divides hw and is a lane multiple."""
    if hw <= tile:
        return hw
    t = (min(tile, hw) // 128) * 128
    while t >= 128:
        if hw % t == 0:
            return t
        t -= 128
    return hw  # fallback: single full-row tile (block == full array dim)


@functools.partial(jax.jit, static_argnames=("n_class", "rate", "tile"))
def iou_ce_loss(preds, truth, *, n_class=12, rate=0.4, tile=32768):
    N, C, H, W = preds.shape
    assert C == n_class
    HW = H * W

    # Free reshapes only — no HBM transpose. Pixels become the lane axis.
    logits = preds.reshape(N, C, HW).astype(jnp.float32)
    labels = truth.reshape(N, 1, HW).astype(jnp.int32)

    tp = _pick_tile(HW, tile)
    grid = (N, HW // tp)

    ce_parts, hist_parts = pl.pallas_call(
        _iou_ce_kernel,
        out_shape=(
            jax.ShapeDtypeStruct((N, 1, 1), jnp.float32),
            jax.ShapeDtypeStruct((N, n_class, n_class), jnp.float32),
        ),
        grid_spec=pltpu.PrefetchScalarGridSpec(
            num_scalar_prefetch=0,
            grid=grid,
            in_specs=[
                pl.BlockSpec((1, C, tp), lambda n, i: (n, 0, i)),
                pl.BlockSpec((1, 1, tp), lambda n, i: (n, 0, i)),
            ],
            out_specs=[
                pl.BlockSpec((1, 1, 1), lambda n, i: (n, 0, 0)),
                pl.BlockSpec((1, n_class, n_class), lambda n, i: (n, 0, 0)),
            ],
            scratch_shapes=[
                pltpu.VMEM((1, tp), jnp.float32),             # per-pixel CE partials
                pltpu.VMEM((n_class, n_class), jnp.float32),  # confusion matrix
            ],
        ),
        compiler_params=pltpu.CompilerParams(
            dimension_semantics=("parallel", "arbitrary"),
            vmem_limit_bytes=32 * 1024 * 1024,
        ),
    )(logits, labels)

    P = N * HW
    ce = ce_parts.sum() / P                 # CrossEntropyLoss(reduction='mean')
    hist = hist_parts.sum(axis=0)           # combine per-batch-shard partials

    # mean IoU from confusion matrix (nanmean semantics of the numpy ref)
    diag = jnp.diag(hist)
    denom = hist.sum(axis=1) + hist.sum(axis=0) - diag
    iu = jnp.where(denom > 0, diag / jnp.where(denom > 0, denom, 1.0), jnp.nan)
    miou = jnp.nanmean(iu)

    return (1.0 - miou) * rate + ce * (1.0 - rate)


def _numpy_reference(preds, truth, n_class=12, rate=0.4):
    p = np.asarray(preds, dtype=np.float64)          # (N, C, H, W)
    t = np.asarray(truth, dtype=np.int64)            # (N, H, W)
    # cross entropy (mean over pixels)
    m = p.max(axis=1, keepdims=True)
    lse = m + np.log(np.exp(p - m).sum(axis=1, keepdims=True))
    logp = p - lse
    tgt_logp = np.take_along_axis(logp, t[:, None, :, :], axis=1)[:, 0]
    ce = -tgt_logp.mean()
    # miou
    pred_lbl = p.argmax(axis=1)
    mask = (t >= 0) & (t < n_class)
    hist = np.bincount(n_class * t[mask].astype(int) + pred_lbl[mask],
                       minlength=n_class ** 2).reshape(n_class, n_class)
    with np.errstate(divide="ignore", invalid="ignore"):
        iu = np.diag(hist) / (hist.sum(axis=1) + hist.sum(axis=0) - np.diag(hist))
    miou = np.nanmean(iu)
    return (1.0 - miou) * rate + ce * (1.0 - rate)


if __name__ == "__main__":
    key = jax.random.PRNGKey(0)
    k1, k2 = jax.random.split(key)
    N, C, H, W = 2, 12, 16, 16
    preds = jax.random.normal(k1, (N, C, H, W), dtype=jnp.float32)
    truth = jax.random.randint(k2, (N, H, W), 0, C, dtype=jnp.int32)

    loss = iou_ce_loss(preds, truth, n_class=C, rate=0.4)
    loss = jax.block_until_ready(loss)

    ref = _numpy_reference(np.asarray(preds), np.asarray(truth), n_class=C, rate=0.4)
    np.testing.assert_allclose(float(loss), float(ref), rtol=1e-3, atol=1e-3)

    print("KERNEL_OK")
</pallas_src>

<mosaic_0001>
module attributes {stable_mosaic.version = 11 : i64} {
  func.func @_iou_ce_kernel(%arg0: i32, %arg1: i32, %arg2: memref<1x12x256xf32, #tpu.memory_space<vmem>>, %arg3: memref<1x1x256xi32, #tpu.memory_space<vmem>>, %arg4: memref<1x1x1xf32, #tpu.memory_space<vmem>>, %arg5: memref<1x12x12xf32, #tpu.memory_space<vmem>>, %arg6: memref<1x256xf32, #tpu.memory_space<vmem>>, %arg7: memref<12x12xf32, #tpu.memory_space<vmem>>) attributes {dimension_semantics = [#tpu.dimension_semantics<parallel>, #tpu.dimension_semantics<arbitrary>], iteration_bounds = array<i64: 2, 1>, scalar_prefetch = 0 : i64, scratch_operands = 2 : i64, tpu.core_type = #tpu.core_type<tc>, window_params = [{transform_indices = @transform_0, window_bounds = array<i64: 1, 12, 256>}, {transform_indices = @transform_1, window_bounds = array<i64: 1, 1, 256>}, {transform_indices = @transform_2, window_bounds = array<i64: 1, 1, 1>}, {transform_indices = @transform_3, window_bounds = array<i64: 1, 12, 12>}]} {
    %c0_i32 = arith.constant 0 : i32
    %0 = arith.cmpi eq, %arg1, %c0_i32 : i32
    %1 = arith.extui %0 : i1 to i32
    %c0_i32_0 = arith.constant 0 : i32
    %2 = arith.cmpi ne, %1, %c0_i32_0 : i32
    scf.if %2 {
      %cst_23 = arith.constant 0.000000e+00 : f32
      %55 = vector.broadcast %cst_23 : f32 to vector<1x256xf32>
      %c0_24 = arith.constant 0 : index
      %c0_25 = arith.constant 0 : index
      %56 = vector.load %arg6[%c0_24, %c0_25] : memref<1x256xf32, #tpu.memory_space<vmem>>, vector<1x256xf32>
      tpu.vector_store %arg6[%c0_24, %c0_25], %55 {strides = array<i32>} : memref<1x256xf32, #tpu.memory_space<vmem>>, vector<1x256xf32>,
      %cst_26 = arith.constant 0.000000e+00 : f32
      %57 = vector.broadcast %cst_26 : f32 to vector<12x12xf32>
      %c0_27 = arith.constant 0 : index
      %c0_28 = arith.constant 0 : index
      %58 = vector.load %arg7[%c0_27, %c0_28] : memref<12x12xf32, #tpu.memory_space<vmem>>, vector<12x12xf32>
      tpu.vector_store %arg7[%c0_27, %c0_28], %57 {strides = array<i32>} : memref<12x12xf32, #tpu.memory_space<vmem>>, vector<12x12xf32>,
    } else {
    }
    %c0 = arith.constant 0 : index
    %c0_1 = arith.constant 0 : index
    %c0_2 = arith.constant 0 : index
    %3 = vector.load %arg2[%c0, %c0_1, %c0_2] : memref<1x12x256xf32, #tpu.memory_space<vmem>>, vector<1x12x256xf32>
    %4 = vector.shape_cast %3 : vector<1x12x256xf32> to vector<12x256xf32>
    %c0_3 = arith.constant 0 : index
    %c0_4 = arith.constant 0 : index
    %c0_5 = arith.constant 0 : index
    %5 = vector.load %arg3[%c0_3, %c0_4, %c0_5] : memref<1x1x256xi32, #tpu.memory_space<vmem>>, vector<1x1x256xi32>
    %6 = vector.shape_cast %5 : vector<1x1x256xi32> to vector<1x256xi32>
    %7 = tpu.iota {dimensions = array<i32: 0>} : vector<12x256xi32>
    %cst = arith.constant dense<0xFF800000> : vector<256xf32>
    %8 = vector.multi_reduction <maximumf>, %4, %cst [0] : vector<12x256xf32> to vector<256xf32>
    %9 = vector.shape_cast %8 : vector<256xf32> to vector<1x256xf32>
    %10 = vector.broadcast %9 : vector<1x256xf32> to vector<12x256xf32>
    %11 = arith.subf %4, %10 : vector<12x256xf32>
    %12 = math.exp %11 : vector<12x256xf32>
    %cst_6 = arith.constant dense<0.000000e+00> : vector<256xf32>
    %13 = vector.multi_reduction <add>, %12, %cst_6 [0] : vector<12x256xf32> to vector<256xf32>
    %14 = vector.shape_cast %13 : vector<256xf32> to vector<1x256xf32>
    %15 = math.log %14 : vector<1x256xf32>
    %16 = arith.addf %9, %15 : vector<1x256xf32>
    %17 = vector.broadcast %6 : vector<1x256xi32> to vector<12x256xi32>
    %18 = arith.cmpi eq, %7, %17 : vector<12x256xi32>
    %cst_7 = arith.constant 0.000000e+00 : f32
    %19 = vector.broadcast %cst_7 : f32 to vector<12x256xf32>
    %20 = arith.select %18, %4, %19 : vector<12x256xi1>, vector<12x256xf32>
    %cst_8 = arith.constant dense<0.000000e+00> : vector<256xf32>
    %21 = vector.multi_reduction <add>, %20, %cst_8 [0] : vector<12x256xf32> to vector<256xf32>
    %22 = vector.shape_cast %21 : vector<256xf32> to vector<1x256xf32>
    %c0_9 = arith.constant 0 : index
    %c0_10 = arith.constant 0 : index
    %23 = vector.load %arg6[%c0_9, %c0_10] : memref<1x256xf32, #tpu.memory_space<vmem>>, vector<1x256xf32>
    %24 = arith.subf %16, %22 : vector<1x256xf32>
    %25 = arith.addf %23, %24 : vector<1x256xf32>
    %c0_11 = arith.constant 0 : index
    %c0_12 = arith.constant 0 : index
    %26 = vector.load %arg6[%c0_11, %c0_12] : memref<1x256xf32, #tpu.memory_space<vmem>>, vector<1x256xf32>
    tpu.vector_store %arg6[%c0_11, %c0_12], %25 {strides = array<i32>} : memref<1x256xf32, #tpu.memory_space<vmem>>, vector<1x256xf32>,
    %27 = vector.broadcast %9 : vector<1x256xf32> to vector<12x256xf32>
    %28 = arith.cmpf oeq, %4, %27 : vector<12x256xf32>
    %c12_i32 = arith.constant 12 : i32
    %29 = vector.broadcast %c12_i32 : i32 to vector<12x256xi32>
    %30 = arith.select %28, %7, %29 : vector<12x256xi1>, vector<12x256xi32>
    %cst_13 = arith.constant dense<2147483647> : vector<256xi32>
    %31 = vector.multi_reduction <minsi>, %30, %cst_13 [0] : vector<12x256xi32> to vector<256xi32>
    %32 = vector.shape_cast %31 : vector<256xi32> to vector<1x256xi32>
    %33 = vector.broadcast %32 : vector<1x256xi32> to vector<12x256xi32>
    %34 = arith.cmpi eq, %7, %33 : vector<12x256xi32>
    %c0_i32_14 = arith.constant 0 : i32
    %35 = vector.broadcast %c0_i32_14 : i32 to vector<1x256xi32>
    %36 = arith.cmpi sge, %6, %35 : vector<1x256xi32>
    %c12_i32_15 = arith.constant 12 : i32
    %37 = vector.broadcast %c12_i32_15 : i32 to vector<1x256xi32>
    %38 = arith.cmpi slt, %6, %37 : vector<1x256xi32>
    %39 = arith.andi %36, %38 : vector<1x256xi1>
    %40 = vector.broadcast %39 : vector<1x256xi1> to vector<12x256xi1>
    %41 = arith.andi %18, %40 : vector<12x256xi1>
    %42 = arith.extui %41 : vector<12x256xi1> to vector<12x256xi32>
    %43 = arith.sitofp %42 : vector<12x256xi32> to vector<12x256xf32>
    %44 = arith.truncf %43 : vector<12x256xf32> to vector<12x256xbf16>
    %45 = arith.extui %34 : vector<12x256xi1> to vector<12x256xi32>
    %46 = arith.sitofp %45 : vector<12x256xi32> to vector<12x256xf32>
    %47 = arith.truncf %46 : vector<12x256xf32> to vector<12x256xbf16>
    %c0_16 = arith.constant 0 : index
    %c0_17 = arith.constant 0 : index
    %48 = vector.load %arg7[%c0_16, %c0_17] : memref<12x12xf32, #tpu.memory_space<vmem>>, vector<12x12xf32>
    %cst_18 = arith.constant dense<0.000000e+00> : vector<12x12xf32>
    %49 = tpu.matmul %44, %47, %cst_18 {dimension_numbers = #tpu.dot_dimension_numbers<[1], [1], [0], [0], [0, 0, 1, 0], [], []>} : vector<12x256xbf16>, vector<12x256xbf16>, vector<12x12xf32> -> vector<12x12xf32>
    %50 = arith.addf %48, %49 : vector<12x12xf32>
    %c0_19 = arith.constant 0 : index
    %c0_20 = arith.constant 0 : index
    %51 = vector.load %arg7[%c0_19, %c0_20] : memref<12x12xf32, #tpu.memory_space<vmem>>, vector<12x12xf32>
    tpu.vector_store %arg7[%c0_19, %c0_20], %50 {strides = array<i32>} : memref<12x12xf32, #tpu.memory_space<vmem>>, vector<12x12xf32>,
    %c0_i32_21 = arith.constant 0 : i32
    %52 = arith.cmpi eq, %arg1, %c0_i32_21 : i32
    %53 = arith.extui %52 : i1 to i32
    %c0_i32_22 = arith.constant 0 : i32
    %54 = arith.cmpi ne, %53, %c0_i32_22 : i32
    scf.if %54 {
      %c0_23 = arith.constant 0 : index
      %c0_24 = arith.constant 0 : index
      %55 = vector.load %arg6[%c0_23, %c0_24] : memref<1x256xf32, #tpu.memory_space<vmem>>, vector<1x256xf32>
      %56 = vector.shape_cast %55 : vector<1x256xf32> to vector<1x1x256xf32>
      %cst_25 = arith.constant dense<0.000000e+00> : vector<1xf32>
      %57 = vector.multi_reduction <add>, %56, %cst_25 [1, 2] : vector<1x1x256xf32> to vector<1xf32>
      %58 = vector.shape_cast %57 : vector<1xf32> to vector<1x1x1xf32>
      %59 = vector.extract %58[0, 0, 0] : f32 from vector<1x1x1xf32>
      %60 = vector.broadcast %59 : f32 to vector<1x1x1xf32>
      %c0_26 = arith.constant 0 : index
      %c0_27 = arith.constant 0 : index
      %c0_28 = arith.constant 0 : index
      %61 = vector.load %arg4[%c0_26, %c0_27, %c0_28] : memref<1x1x1xf32, #tpu.memory_space<vmem>>, vector<1x1x1xf32>
      tpu.vector_store %arg4[%c0_26, %c0_27, %c0_28], %60 {strides = array<i32>} : memref<1x1x1xf32, #tpu.memory_space<vmem>>, vector<1x1x1xf32>,
      %c0_29 = arith.constant 0 : index
      %c0_30 = arith.constant 0 : index
      %62 = vector.load %arg7[%c0_29, %c0_30] : memref<12x12xf32, #tpu.memory_space<vmem>>, vector<12x12xf32>
      %63 = vector.shape_cast %62 : vector<12x12xf32> to vector<1x12x12xf32>
      %c0_31 = arith.constant 0 : index
      %c0_32 = arith.constant 0 : index
      %c0_33 = arith.constant 0 : index
      %64 = vector.load %arg5[%c0_31, %c0_32, %c0_33] : memref<1x12x12xf32, #tpu.memory_space<vmem>>, vector<1x12x12xf32>
      tpu.vector_store %arg5[%c0_31, %c0_32, %c0_33], %63 {strides = array<i32>} : memref<1x12x12xf32, #tpu.memory_space<vmem>>, vector<1x12x12xf32>,
    } else {
    }
    return
  }
  func.func @transform_0(%arg0: i32, %arg1: i32) -> (i32, i32, i32) {
    %c0_i32 = arith.constant 0 : i32
    %c0_i32_0 = arith.constant 0 : i32
    return %arg0, %c0_i32, %arg1 : i32, i32, i32
  }
  func.func @transform_1(%arg0: i32, %arg1: i32) -> (i32, i32, i32) {
    %c0_i32 = arith.constant 0 : i32
    %c0_i32_0 = arith.constant 0 : i32
    return %arg0, %c0_i32, %arg1 : i32, i32, i32
  }
  func.func @transform_2(%arg0: i32, %arg1: i32) -> (i32, i32, i32) {
    %c0_i32 = arith.constant 0 : i32
    %c0_i32_0 = arith.constant 0 : i32
    %c0_i32_1 = arith.constant 0 : i32
    return %arg0, %c0_i32, %c0_i32_0 : i32, i32, i32
  }
  func.func @transform_3(%arg0: i32, %arg1: i32) -> (i32, i32, i32) {
    %c0_i32 = arith.constant 0 : i32
    %c0_i32_0 = arith.constant 0 : i32
    %c0_i32_1 = arith.constant 0 : i32
    return %arg0, %c0_i32, %c0_i32_0 : i32, i32, i32
  }
}

</mosaic_0001>

<bundles_post_ra>
// kernel: iou_ce_loss.1
= control target key start
LH: loop header
LB: loop body
LE: loop exit
PB: predicated region body
PF: predicated region fallthrough
CT: control target
= control target key end

     0   :  { %s760_s12 = smov 0   ;;  %s762_s13 = smov 0   ;;  %s930_s0 = inlined_call_operand.vmem [shape: f32[2,12,256], index: 0, kind: input, shape index: {}]   ;;  %s931_s1 = inlined_call_operand.vmem [shape: s32[2,1,256], index: 1, kind: input, shape index: {}]   ;;  %s932_s2 = inlined_call_operand.vmem [shape: f32[2,1,1], index: 2, kind: output, shape index: {0}]   ;;  %s933_s3 = inlined_call_operand.vmem [shape: f32[2,12,12], index: 3, kind: output, shape index: {1}]  }
   0x1   :  { %s764_s14 = smov 0  }
   0x2 LB: > { %s26_s15 = sadd.s32 1, %s730_s13  ;;  %p644_p0 = scmp.ge.s32.totalorder %s734_s14, 1  ;;  %s734_s14 = sphi %s764_s14, %s14_s14   ;;  %s730_s13 = sphi %s762_s13, %s937_s13   ;;  %s726_s12 = sphi %s760_s12, %s936_s12  }
   0x3   : > { %p28_p1 = scmp.ge.s32.totalorder %s26_s15, 2  ;;  %p175_p2 = scmp.lt.s32.totalorder %s734_s14, 3 }
   0x5   : > { %s939_s15 = smov (%p28_p1, %s26_s15), 0  ;;  %p176_p3 = pnand %p644_p0, %p175_p2 }
   0x6   : > { %p215_p4 = scmp.lt.s32.totalorder (!%p176_p3), %s726_s12, 1  ;;  %v246_v0 = vlaneseq (!%p176_p3)  ;;  %v736_v2 = vmov (!%p176_p3), 0.0   ;;  %vm263_vm1 = vcmask (!%p176_p3), 1043456   ;;  %v737_v17 = vmov (!%p176_p3), 0  }
   0x7   : > { %179 = sbr.rel (%p176_p3) target bundleno = 310 (0x136), region = 28  ;;  %v738_v28 = vmov (!%p176_p3), 1.0|1.0  }
   0x8   : > { %vm780_vm0 = vcmp.lt.s32.totalorder (!%p176_p3), %v246_v0, 256  ;;  %v788_v3 = vshrl.u32 (!%p176_p3), %v246_v0, 7 }
   0x9   : > { %250 = vst.msk [vmem:[#allocation2] sm:$0x3] (!%p176_p3), %vm780_vm0, %v736_v2 }
   0xa   : > { %v804_v7 = vsub.s32 (!%p176_p3), 1, %v788_v3  ;;  %v822_v21 = vadd.s32 (!%p176_p3), 8, %v788_v3  ;;  %v840_v32 = vsub.s32 (!%p176_p3), 0, %v788_v3 }
   0xe   : > { %s941_s12 = smov (!%p215_p4, %s726_s12), 1 }
   0xf   : > { %s668_s16 = sshll.u32 %s941_s12, 5  ;;  %s647_s17 = sshll.u32 %s941_s12, 1 }
  0x10   : > { %s222_s20 = scalar_lea.vmem %s930_s0, %s668_s16  ;;  %s231_s23 = scalar_lea.vmem %s931_s1, %s647_s17 }
  0x11   : > { %v797_v4 = vld [vmem:[%s222_s20 + $0x8] sm:$0xff]  ;;  %v799_v5 = vld [vmem:[%s222_s20 + $0x18] sm:$0xf]  ;;  %v801_v6 = vld [vmem:[%s222_s20] sm:$0xff]  ;;  %s669_s24 = sshll.u32 %s941_s12, 4  ;;  %s235_s30 = scalar_lea.vmem %s932_s2, %s941_s12 }
  0x12   : > { %v272_v8 = vsel %vm263_vm1, %v799_v5, -inf  ;;  %v808_v9 = vld [vmem:[%s222_s20 + $0x10] sm:$0xf]  ;;  %v259_v10 = vld [vmem:[%s231_s23] sm:$0x3]  ;;  %s240_s27 = scalar_lea.vmem %s933_s3, %s669_s24 }
  0x13   : > { %v273_v11 = vmax.f32 %v797_v4, %v272_v8  ;;  %v264_v12 = vsel %vm263_vm1, %v808_v9, -inf  ;;  %vm409_vm2 = vcmp.ge.s32.totalorder %v259_v10, 0  ;;  %vm410_vm3 = vcmp.lt.s32.totalorder %v259_v10, 12 }
  0x14   : > { %v265_v13 = vmax.f32 %v801_v6, %v264_v12  ;;  %v815_v15 = vrot.slane %v259_v10, %v804_v7  ;;  %vm411_vm4 = vmand %vm409_vm2, %vm410_vm3  ;;  %v317_v50 = vrot.slane %v259_v10, %v840_v32 }
  0x15   : > { %v274_v14 = vrot.slane %v273_v11, 4  ;;  %v817_v18 = vsel %vm411_vm4, 1, %v737_v17 }
  0x16   : > { %v266_v16 = vrot.slane %v265_v13, 4  ;;  %v420_v20 = vrot.slane %v817_v18, %v804_v7  ;;  %vm323_vm5 = vcmp.eq.s32.totalorder %v788_v3, %v815_v15  ;;  %vm325_vm7 = vcmp.eq.s32.totalorder %v822_v21, %v815_v15 }
  0x17   : > { %v275_v19 = vmax.f32 %v273_v11, %v274_v14  ;;  %v329_v57 = vsel %vm325_vm7, %v799_v5, 0.0  ;;  %v327_v60 = vsel %vm323_vm5, %v797_v4, 0.0 }
  0x18   : > { %v267_v22 = vmax.f32 %v265_v13, %v266_v16  ;;  %vm422_vm6 = vcmp.eq.s32.totalorder %v420_v20, 1  ;;  %v338_v0 = vsel %vm263_vm1, %v329_v57, 0.0 }
  0x19   : > { %v276_v23 = vrot.slane %v275_v19, 2  ;;  %vm424_vm8 = vmand %vm323_vm5, %vm422_vm6  ;;  %v339_v15 = vadd.f32 %v338_v0, %v327_v60  ;;  %v346_v60 = vld [vmem:[#allocation2] sm:$0x3] }
  0x1a   : > { %v268_v24 = vrot.slane %v267_v22, 2  ;;  %vm426_vm9 = vmand %vm325_vm7, %vm422_vm6 }
  0x1b   : > { %v277_v25 = vmax.f32 %v275_v19, %v276_v23  ;;  %vm662_vm10 = vmpackc.low %vm426_vm9, %vm424_vm8  ;;  %vm324_vm8 = vcmp.eq.s32.totalorder %v822_v21, %v317_v50  ;;  %vm322_vm9 = vcmp.eq.s32.totalorder %v788_v3, %v317_v50  ;;  %v340_v23 = vrot.slane %v339_v15, 4 }
  0x1c   : > { %v269_v26 = vmax.f32 %v267_v22, %v268_v24  ;;  %663 = vmatprep.mubr.msk.bf16.mxu0 %vm662_vm10, %v738_v28  ;;  %v328_v61 = vsel %vm324_vm8, %v808_v9, 0.0 }
  0x1d   : > { %v278_v27 = vrot.slane %v277_v25, 1  ;;  %v330_v14 = vsel %vm263_vm1, %v328_v61, 0.0 }
  0x1e   : > { %v270_v29 = vrot.slane %v269_v26, 1 }
  0x1f   : > { %v835_v30 = vmax.f32 %v277_v25, %v278_v27 }
  0x20   : > { %v837_v31 = vmax.f32 %v269_v26, %v270_v29 }
  0x21   : > { %v281_v33 = vsub.f32 %v797_v4, %v835_v30  ;;  %v283_v34 = vsub.f32 %v799_v5, %v835_v30  ;;  %vm374_vm11 = vcmp.eq.f32.partialorder %v797_v4, %v835_v30  ;;  %vm376_vm12 = vcmp.eq.f32.partialorder %v799_v5, %v835_v30 }
  0x22   : > { %v378_v35 = vsel %vm374_vm11, %v788_v3, 12  ;;  %v380_v36 = vsel %vm376_vm12, %v822_v21, 12  ;;  %v280_v37 = vsub.f32 %v801_v6, %v837_v31  ;;  %v282_v38 = vsub.f32 %v808_v9, %v837_v31 }
  0x23   : > { %v286_v39 = vmul.f32 1.442695, %v281_v33  ;;  %v290_v40 = vmul.f32 1.442695, %v283_v34  ;;  %v393_v41 = vsel %vm263_vm1, %v380_v36, 2147483647  ;;  %vm373_vm13 = vcmp.eq.f32.partialorder %v801_v6, %v837_v31 }
  0x24   : > { %vm394_vm14 = vcmp.lt.s32.totalorder %v378_v35, %v393_v41  ;;  %v284_v42 = vmul.f32 1.442695, %v280_v37  ;;  %v288_v43 = vmul.f32 1.442695, %v282_v38  ;;  %vm375_vm15 = vcmp.eq.f32.partialorder %v808_v9, %v837_v31 }
  0x25   : > { %700 = vpow2.f32 %v286_v39  ;;  %v395_v44 = vsel %vm394_vm14, %v378_v35, %v393_v41  ;;  %v377_v45 = vsel %vm373_vm13, %v788_v3, 12  ;;  %v379_v46 = vsel %vm375_vm15, %v822_v21, 12 }
  0x26   : > { %702 = vpow2.f32 %v290_v40  ;;  %v396_v47 = vrot.slane %v395_v44, 4  ;;  %v381_v48 = vsel %vm263_vm1, %v379_v46, 2147483647  ;;  %v416_v5 = vrot.slane %v817_v18, %v840_v32 }
  0x27   : > { %704 = vpow2.f32 %v284_v42  ;;  %vm382_vm2 = vcmp.lt.s32.totalorder %v377_v45, %v381_v48  ;;  %v326_v4 = vsel %vm322_vm9, %v801_v6, 0.0  ;;  %v341_v33 = vadd.f32 %v340_v23, %v339_v15 }
  0x28   : > { %vm397_vm3 = vcmp.lt.s32.totalorder %v395_v44, %v396_v47  ;;  %706 = vpow2.f32 %v288_v43  ;;  %v383_v49 = vsel %vm382_vm2, %v377_v45, %v381_v48  ;;  %vm421_vm14 = vcmp.eq.s32.totalorder %v416_v5, 1 }
  0x29   : > { %v398_v51 = vsel %vm397_vm3, %v395_v44, %v396_v47  ;;  %v384_v52 = vrot.slane %v383_v49, 4  ;;  %v331_v6 = vadd.f32 %v330_v14, %v326_v4  ;;  %v342_v39 = vrot.slane %v341_v33, 2 }
  0x2a   : > { %v399_v53 = vrot.slane %v398_v51, 2  ;;  %v739_v45 = vmov 1966171168  }
  0x2b   : > { %vm385_vm4 = vcmp.lt.s32.totalorder %v383_v49, %v384_v52  ;;  %v332_v26 = vrot.slane %v331_v6, 4  ;;  %v343_v42 = vadd.f32 %v342_v39, %v341_v33  ;;  %v353_v46 = vunpack.c.l.s4 %v739_v45 }
  0x2c   : > { %vm400_vm6 = vcmp.lt.s32.totalorder %v398_v51, %v399_v53  ;;  %v386_v54 = vsel %vm385_vm4, %v383_v49, %v384_v52  ;;  %vm425_vm4 = vmand %vm324_vm8, %vm421_vm14  ;;  %vm511_vm8 = vcmask 1040384  }
  0x2d   : > { %v401_v55 = vsel %vm400_vm6, %v398_v51, %v399_v53  ;;  %v387_v56 = vrot.slane %v386_v54, 2  ;;  %v333_v36 = vadd.f32 %v332_v26, %v331_v6  ;;  %v344_v43 = vrot.slane %v343_v42, 1 }
  0x2e   : > { %v402_v58 = vrot.slane %v401_v55, 1 }
  0x2f   : > { %v701_v59 = vpop.eup %700  ;;  %vm388_vm10 = vcmp.lt.s32.totalorder %v386_v54, %v387_v56  ;;  %v334_v41 = vrot.slane %v333_v36, 2  ;;  %v345_v49 = vadd.f32 %v344_v43, %v343_v42 }
  0x30   : > { %v703_v62 = vpop.eup %702  ;;  %vm403_vm11 = vcmp.lt.s32.totalorder %v401_v55, %v402_v58  ;;  %v389_v63 = vsel %vm388_vm10, %v386_v54, %v387_v56  ;;  %vm253_vm10 = vcmask 93184  }
  0x31   : > { %v705_v8 = vpop.eup %704  ;;  %v404_v10 = vsel %vm403_vm11, %v401_v55, %v402_v58  ;;  %v390_v11 = vrot.slane %v389_v63, 1  ;;  %v300_v12 = vsel %vm263_vm1, %v703_v62, 0.0  ;;  %254 = vst.msk [vmem:[#allocation3 + $0x8] sm:$0xf] %vm253_vm10, %v736_v2 }
  0x32   : > { %v707_v13 = vpop.eup %706  ;;  %vm406_vm5 = vcmp.eq.s32.totalorder %v788_v3, %v404_v10  ;;  %vm408_vm7 = vcmp.eq.s32.totalorder %v822_v21, %v404_v10  ;;  %v301_v9 = vadd.f32 %v701_v59, %v300_v12 }
  0x33   : > { %vm658_vm12 = vmpackc.low %vm408_vm7, %vm406_vm5  ;;  %vm391_vm13 = vcmp.lt.s32.totalorder %v389_v63, %v390_v11  ;;  %v292_v16 = vsel %vm263_vm1, %v707_v13, 0.0 }
  0x34   : > { %659 = vmatprep.subr.msk.bf16.mxu0 %vm658_vm12, %v738_v28  ;;  %v392_v17 = vsel %vm391_vm13, %v389_v63, %v390_v11  ;;  %v302_v18 = vrot.slane %v301_v9, 4  ;;  %v293_v19 = vadd.f32 %v705_v8, %v292_v16  ;;  %vm423_vm1 = vmand %vm322_vm9, %vm421_vm14  ;;  %vm251_vm9 = vcmask 97280  }
  0x35   : > { %vm405_vm15 = vcmp.eq.s32.totalorder %v788_v3, %v392_v17  ;;  %vm407_vm2 = vcmp.eq.s32.totalorder %v822_v21, %v392_v17  ;;  %vm664_vm6 = vmpackc.low %vm425_vm4, %vm423_vm1  ;;  %v335_v21 = vadd.f32 %v334_v41, %v333_v36  ;;  %252 = vst.msk [vmem:[#allocation3] sm:$0xff] %vm251_vm9, %v736_v2 }
  0x36   : > { %vm660_vm3 = vmpackc.low %vm407_vm2, %vm405_vm15  ;;  %v303_v20 = vadd.f32 %v302_v18, %v301_v9  ;;  %v294_v22 = vrot.slane %v293_v19, 4 }
  0x37   : > { %661 = vmatpush1.bf16.xpose.msk.msra.mxu0 %vm660_vm3, %v738_v28  ;;  %v336_v44 = vrot.slane %v335_v21, 1 }
  0x38   : > { %v304_v24 = vrot.slane %v303_v20, 2  ;;  %v295_v25 = vadd.f32 %v294_v22, %v293_v19  ;;  %v448_v9 = vld [vmem:[#allocation3 + $0x8] sm:$0xf] }
  0x39   : > { %v337_v53 = vadd.f32 %v336_v44, %v335_v21 }
  0x3a   : > { %v305_v27 = vadd.f32 %v304_v24, %v303_v20  ;;  %v296_v29 = vrot.slane %v295_v25, 2 }
  0x3c   : > { %v306_v34 = vrot.slane %v305_v27, 1  ;;  %v297_v35 = vadd.f32 %v296_v29, %v295_v25  ;;  %v447_v4 = vld [vmem:[#allocation3] sm:$0xff] }
  0x3e   : > { %v307_v37 = vadd.f32 %v306_v34, %v305_v27  ;;  %v298_v38 = vrot.slane %v297_v35, 1  ;;  %665 = vmatmul.mubr.msk.bf16.vlgmr.msra.gmra.mrb[0].mxu0 %vm664_vm6, %v738_v28  ;;  %v354_v28 = vunpack.c.0.s8 %v353_v46 }
  0x40   : > { %708 = vlog2.f32 %v307_v37  ;;  %v299_v40 = vadd.f32 %v298_v38, %v297_v35  ;;  %v357_v57 = vsub.s32 %v354_v28, %v788_v3 }
  0x42   : > { %710 = vlog2.f32 %v299_v40 }
  0x4a   : > { %v709_v47 = vpop.eup %708 }
  0x4b   : > { %v311_v48 = vmul.f32 0.6931472, %v709_v47 }
  0x4c   : > { %v711_v50 = vpop.eup %710 }
  0x4d   : > { %v313_v51 = vadd.f32 %v311_v48, %v835_v30  ;;  %v309_v52 = vmul.f32 0.6931472, %v711_v50 }
  0x4f   : > { %v348_v54 = vsub.f32 %v313_v51, %v345_v49  ;;  %v312_v55 = vadd.f32 %v309_v52, %v837_v31 }
  0x51   : > { %v347_v56 = vsub.f32 %v312_v55, %v337_v53 }
  0x53   : > { %v351_v58 = vcombine.low %v347_v56, %v348_v54 }
  0x55   : > { %v358_v59 = vrot.slane %v351_v58, %v357_v57 }
  0x57   : > { %v365_v61 = vrot.slane %v358_v59, %v357_v57 }
  0x59   : > { %v367_v62 = vadd.f32 %v365_v61, %v346_v60 }
  0x5b   : > { %372 = vst.msk [vmem:[#allocation2] sm:$0x3] %vm780_vm0, %v367_v62  ;;  %vm525_vm0 = vcmask 0  }
  0x62   : > { %v499_v63 = vld [vmem:[#allocation2] sm:$0x3] }
  0x63   : > { %v504_v30 = vrot.slane %v499_v63, %v840_v32  ;;  %v508_v0 = vrot.slane %v499_v63, %v804_v7 }
  0x65   : > { %v512_v5 = vsel %vm511_vm8, %v504_v30, 0.0  ;;  %v513_v8 = vsel %vm511_vm8, %v508_v0, 0.0 }
  0x66   : > { %v514_v31 = vadd.f32 %v513_v8, %v512_v5 }
  0x68   : > { %515 = vadd.xlane.f32.xlu0 %v514_v31 }
  0xf5   : > { %v516_v1 = vpop.xlane.xlu0 %515 }
  0xf6   : > { %v517_v3 = vrot.slane %v516_v1, 4 }
  0xf8   : > { %v518_v10 = vadd.f32 %v517_v3, %v516_v1 }
  0xfa   : > { %v519_v11 = vrot.slane %v518_v10, 2 }
  0xfc   : > { %v520_v32 = vadd.f32 %v519_v11, %v518_v10 }
  0xfe   : > { %v521_v12 = vrot.slane %v520_v32, 1 }
 0x100   : > { %v522_v7 = vadd.f32 %v521_v12, %v520_v32 }
 0x102   : > { %670 = vpush %v522_v7 }
 0x111   : > { %v483_v13 = vpop.f32.mrb[0].mxu0 }
 0x112   : > { %v490_v14 = vadd.f32 %v483_v13, %v447_v4  ;;  %v485_v15 = vpop.f32.mrb[1].mxu0 }
 0x113   : > { %v486_v16 = vpop.f32.mrb[2].mxu0 }
 0x114   : > { %493 = vst.msk [vmem:[#allocation3] sm:$0xff] %vm251_vm9, %v490_v14  ;;  %v491_v17 = vadd.f32 %v486_v16, %v448_v9  ;;  %v488_v2 = vpop.f32.mrb[3].mxu0 }
 0x116   : > { %495 = vst.msk [vmem:[#allocation3 + $0x8] sm:$0xf] %vm253_vm10, %v491_v17 }
 0x11b   : > { %v527_v18 = vld [vmem:[#allocation3] sm:$0xff] }
 0x11c   : > { %529 = vst.msk [vmem:[%s240_s27] sm:$0xff] %vm251_vm9, %v527_v18 }
 0x11d   : > { %v528_v19 = vld [vmem:[#allocation3 + $0x8] sm:$0xf] }
 0x11e   : > { %530 = vst.msk [vmem:[%s240_s27 + $0x8] sm:$0xf] %vm253_vm10, %v528_v19 }
 0x133   : > { %s671_s4 = spop %670 }
 0x134   : > { %v524_v6 = vstv %s671_s4 }
 0x135   : > { %526 = vst.msk [vmem:[%s235_s30] sm:$0x1] %vm525_vm0, %v524_v6 }
 0x136 PF: > { %s14_s14 = sadd.s32 1, %s734_s14   ;;  %s936_s12 = smov %s730_s13 }
 0x137   : > { %p11_p5 = scmp.ge.s32.totalorder %s14_s14, 4   ;;  %s937_s13 = smov %s939_s15 }
 0x139   :  { %13 = sbr.rel (!%p11_p5) target bundleno = 2 (0x2), region = 81 }

</bundles_post_ra>
